<compile_context>
chip_gen: v5e
topology: v5e:2x2
jax: 0.10.0
libtpu: 0.0.40
codegen_flags: <defaults>
</compile_context>

<pallas_src>
import functools

import jax
import jax.numpy as jnp
from jax.experimental import pallas as pl
from jax.experimental.pallas import tpu as pltpu

NNMLP = 600            # hidden width hard-coded in FNET01.__init__
NNMLP_PAD = 640        # padded to 5 * 128 lanes (zero padding -> identical math)
K_CHUNK = 128          # w2 K-streaming chunk (must divide NNMLP_PAD); tunable
TB_MAX = 256           # max batch tile size
MEGACORE_MIN_ROWS = 128  # per-core rows below which splitting is not worth it


def _pick_tb(batch):
    """Balanced batch tiles; >=2 even tiles once the batch is big enough that
    sharding the 'parallel' axis across v7x's 2 TCs pays for the duplicated
    weight DMA."""
    if batch < 2 * MEGACORE_MIN_ROWS:
        return batch                       # single tile, single core
    n_tiles = max(2, pl.cdiv(batch, TB_MAX))
    n_tiles += n_tiles % 2                 # even tile count -> even TC split
    tb = -(-batch // n_tiles)              # ceil -> balanced (no ragged tail)
    return ((tb + 7) // 8) * 8             # sublane-aligned


def _fnet01_kernel(*refs, has_s1, nz1):
    if has_s1:
        (z0_ref, lu_ref, w1_ref, b1_ref, w2k_ref, b2_ref,
         w3s_ref, b3_ref, s1_ref, out_ref, h1_sc, acc_sc) = refs
    else:
        (z0_ref, lu_ref, w1_ref, b1_ref, w2k_ref, b2_ref,
         w3s_ref, b3_ref, out_ref, h1_sc, acc_sc) = refs
        s1_ref = None

    k = pl.program_id(1)
    nk = pl.num_programs(1)

    @pl.when(k == 0)
    def _():
        # hh = tanh(lin1(z0)); stored bf16 in VMEM for the streamed lin2.
        # (tanh kept in f32 here: bf16 tanh only helps if the EUP binds, and
        #  only on v6e/v7x — see review; not applied without a bundle dump.)
        z0_bf = z0_ref[...].astype(jnp.bfloat16)
        h1 = jnp.tanh(
            jnp.dot(z0_bf, w1_ref[...], preferred_element_type=jnp.float32)
            + b1_ref[...])
        h1_sc[...] = h1.astype(jnp.bfloat16)
        acc_sc[...] = jnp.zeros_like(acc_sc)

    # lin2 partial product for this K chunk of w2 (streamed over the grid).
    koff = pl.multiple_of(k * K_CHUNK, K_CHUNK)
    acc_sc[...] += jnp.dot(h1_sc[:, pl.ds(koff, K_CHUNK)], w2k_ref[...],
                           preferred_element_type=jnp.float32)

    @pl.when(k == nk - 1)
    def _():
        z0_bf = z0_ref[...].astype(jnp.bfloat16)
        h2 = jnp.tanh(acc_sc[...] + b2_ref[...]).astype(jnp.bfloat16)
        # scores = lin3(hh) + lin_skip(z0) (+ s1): two dots on static slices
        # of the fused [w3 ; wskip] weight (no in-kernel concatenate).
        scores = (jnp.dot(h2, w3s_ref[:NNMLP_PAD, :],
                          preferred_element_type=jnp.float32)
                  + jnp.dot(z0_bf, w3s_ref[NNMLP_PAD:, :],
                            preferred_element_type=jnp.float32)
                  + b3_ref[...])
        if has_s1:
            scores = scores + s1_ref[...]
        # z1 = Bernoulli(sigmoid(scores)) via logit-space threshold.
        out_ref[:, :nz1] = scores
        out_ref[:, nz1:] = (scores > lu_ref[...]).astype(jnp.float32)


@jax.jit
def fnet01_forward(z0, params, u, s1=None):
    """Pallas implementation of FNET01.forward.

    z0:     (B, nz0) float32
    params: prepared params (see prepare_params): padded, fused, bf16 weights
    u:      (B, nz1) float32 uniforms in [0, 1) for the Bernoulli sample
    s1:     optional (B, nz1) float32, added to scores when provided
    returns (scores_z1, z1), both (B, nz1) float32.
    """
    B, nz0 = z0.shape
    nz1 = params["b3"].shape[1]
    has_s1 = s1 is not None

    tb = _pick_tb(B)
    nk = NNMLP_PAD // K_CHUNK
    grid = (pl.cdiv(B, tb), nk)

    # u < sigmoid(s)  <=>  s > logit(u); logit is computed once outside the
    # kernel on a tiny (B, nz1) tensor.
    logit_u = jnp.log(u) - jnp.log1p(-u)

    def batch_spec(d):
        return pl.BlockSpec((tb, d), lambda i, k: (i, 0))

    def const_spec(shape):
        # Constant block index -> stays VMEM-resident across all grid steps.
        return pl.BlockSpec(shape, lambda i, k: (0, 0))

    in_specs = [
        batch_spec(nz0),                                         # z0
        batch_spec(nz1),                                         # logit(u)
        const_spec((nz0, NNMLP_PAD)),                            # w1
        const_spec((1, NNMLP_PAD)),                              # b1
        pl.BlockSpec((K_CHUNK, NNMLP_PAD), lambda i, k: (k, 0)),  # w2 streamed
        const_spec((1, NNMLP_PAD)),                              # b2
        const_spec((NNMLP_PAD + nz0, nz1)),                      # [w3 ; wskip]
        const_spec((1, nz1)),                                    # b3
    ]
    args = [z0, logit_u,
            params["w1"], params["b1"],
            params["w2"], params["b2"],
            params["w3skip"], params["b3"]]
    if has_s1:
        in_specs.append(batch_spec(nz1))                         # s1
        args.append(s1)

    fused = pl.pallas_call(
        functools.partial(_fnet01_kernel, has_s1=has_s1, nz1=nz1),
        out_shape=jax.ShapeDtypeStruct((B, 2 * nz1), jnp.float32),
        grid=grid,
        in_specs=in_specs,
        out_specs=pl.BlockSpec((tb, 2 * nz1), lambda i, k: (i, 0)),
        scratch_shapes=[pltpu.VMEM((tb, NNMLP_PAD), jnp.bfloat16),   # h1 (bf16)
                        pltpu.VMEM((tb, NNMLP_PAD), jnp.float32)],   # lin2 acc
        compiler_params=pltpu.CompilerParams(
            dimension_semantics=("parallel", "arbitrary")),
    )(*args)

    scores = fused[:, :nz1]
    z1 = fused[:, nz1:]
    return scores, z1


def init_params(key, nz0, nz1):
    """PyTorch-like nn.Linear init (U[-1/sqrt(fan_in), 1/sqrt(fan_in)]), width 600."""
    ks = jax.random.split(key, 7)

    def lin(kw, kb, fan_in, fan_out, bias=True):
        bound = 1.0 / jnp.sqrt(float(fan_in))
        w = jax.random.uniform(kw, (fan_in, fan_out), jnp.float32, -bound, bound)
        if not bias:
            return w, None
        b = jax.random.uniform(kb, (1, fan_out), jnp.float32, -bound, bound)
        return w, b

    w1, b1 = lin(ks[0], ks[1], nz0, NNMLP)
    w2, b2 = lin(ks[2], ks[3], NNMLP, NNMLP)
    w3, b3 = lin(ks[4], ks[5], NNMLP, nz1)
    wskip, _ = lin(ks[6], ks[6], nz0, nz1, bias=False)
    return dict(w1=w1, b1=b1, w2=w2, b2=b2, w3=w3, b3=b3, wskip=wskip)


def prepare_params(p):
    """Zero-pad hidden width 600->640 (exact math), fuse [w3; wskip], bf16 weights."""
    pad = NNMLP_PAD - NNMLP
    w1 = jnp.pad(p["w1"], ((0, 0), (0, pad)))
    b1 = jnp.pad(p["b1"], ((0, 0), (0, pad)))
    w2 = jnp.pad(p["w2"], ((0, pad), (0, pad)))
    b2 = jnp.pad(p["b2"], ((0, 0), (0, pad)))
    w3 = jnp.pad(p["w3"], ((0, pad), (0, 0)))
    w3skip = jnp.concatenate([w3, p["wskip"]], axis=0)
    return dict(w1=w1.astype(jnp.bfloat16), b1=b1,
                w2=w2.astype(jnp.bfloat16), b2=b2,
                w3skip=w3skip.astype(jnp.bfloat16), b3=p["b3"])


def fnet01_reference(z0, prep, u, s1=None):
    """Pure-JAX reference mirroring the kernel's bf16-weight quantization."""
    f32 = jnp.float32
    q = lambda x: x.astype(jnp.bfloat16).astype(f32)
    z0q = q(z0)
    w1 = prep["w1"].astype(f32)
    w2 = prep["w2"].astype(f32)
    w3s = prep["w3skip"].astype(f32)
    h = jnp.tanh(z0q @ w1 + prep["b1"])
    h = jnp.tanh(q(h) @ w2 + prep["b2"])
    scores = q(h) @ w3s[:NNMLP_PAD] + z0q @ w3s[NNMLP_PAD:] + prep["b3"]
    if s1 is not None:
        scores = scores + s1
    lu = jnp.log(u) - jnp.log1p(-u)
    z1 = (scores > lu).astype(f32)
    return scores, z1


if __name__ == "__main__":
    nz0, nz1, batch = 32, 16, 8

    key = jax.random.PRNGKey(0)
    k_params, k_z0, k_s1, k_u = jax.random.split(key, 4)

    raw_params = init_params(k_params, nz0, nz1)
    params = prepare_params(raw_params)

    z0 = jax.random.normal(k_z0, (batch, nz0), jnp.float32)
    s1 = jax.random.normal(k_s1, (batch, nz1), jnp.float32)
    u = jax.random.uniform(k_u, (batch, nz1), jnp.float32)

    # Path without s1 (s1=None in the PyTorch forward)
    scores_a, z1_a = fnet01_forward(z0, params, u)
    # Path with s1
    scores_b, z1_b = fnet01_forward(z0, params, u, s1=s1)
    jax.block_until_ready((scores_a, z1_a, scores_b, z1_b))

    ref_a, _ = fnet01_reference(z0, params, u)
    ref_b, _ = fnet01_reference(z0, params, u, s1=s1)

    assert scores_a.shape == (batch, nz1) and z1_a.shape == (batch, nz1)
    assert scores_b.shape == (batch, nz1) and z1_b.shape == (batch, nz1)
    # z1 must be binary
    assert bool(jnp.all((z1_a == 0.0) | (z1_a == 1.0)))
    assert bool(jnp.all((z1_b == 0.0) | (z1_b == 1.0)))
    # kernel matches the pure-JAX reference
    assert bool(jnp.allclose(scores_a, ref_a, atol=1e-3, rtol=1e-3))
    assert bool(jnp.allclose(scores_b, ref_b, atol=1e-3, rtol=1e-3))
    # s1 path differs from no-s1 path by exactly s1
    assert bool(jnp.allclose(scores_b - scores_a, s1, atol=1e-4))

    print("KERNEL_OK")
</pallas_src>

<mosaic_0001>
module attributes {stable_mosaic.version = 11 : i64} {
  func.func @_fnet01_kernel(%arg0: i32, %arg1: i32, %arg2: memref<8x32xf32, #tpu.memory_space<vmem>>, %arg3: memref<8x16xf32, #tpu.memory_space<vmem>>, %arg4: memref<32x640xbf16, #tpu.memory_space<vmem>>, %arg5: memref<1x640xf32, #tpu.memory_space<vmem>>, %arg6: memref<128x640xbf16, #tpu.memory_space<vmem>>, %arg7: memref<1x640xf32, #tpu.memory_space<vmem>>, %arg8: memref<672x16xbf16, #tpu.memory_space<vmem>>, %arg9: memref<1x16xf32, #tpu.memory_space<vmem>>, %arg10: memref<8x32xf32, #tpu.memory_space<vmem>>, %arg11: memref<8x640xbf16, #tpu.memory_space<vmem>>, %arg12: memref<8x640xf32, #tpu.memory_space<vmem>>) attributes {dimension_semantics = [#tpu.dimension_semantics<parallel>, #tpu.dimension_semantics<arbitrary>], iteration_bounds = array<i64: 1, 5>, scalar_prefetch = 0 : i64, scratch_operands = 2 : i64, tpu.core_type = #tpu.core_type<tc>, window_params = [{transform_indices = @transform_0, window_bounds = array<i64: 8, 32>}, {transform_indices = @transform_1, window_bounds = array<i64: 8, 16>}, {pipeline_mode = #tpu.pipeline_mode<synchronous>, transform_indices = @transform_2, window_bounds = array<i64: 32, 640>}, {pipeline_mode = #tpu.pipeline_mode<synchronous>, transform_indices = @transform_3, window_bounds = array<i64: 1, 640>}, {transform_indices = @transform_4, window_bounds = array<i64: 128, 640>}, {pipeline_mode = #tpu.pipeline_mode<synchronous>, transform_indices = @transform_5, window_bounds = array<i64: 1, 640>}, {pipeline_mode = #tpu.pipeline_mode<synchronous>, transform_indices = @transform_6, window_bounds = array<i64: 672, 16>}, {pipeline_mode = #tpu.pipeline_mode<synchronous>, transform_indices = @transform_7, window_bounds = array<i64: 1, 16>}, {transform_indices = @transform_8, window_bounds = array<i64: 8, 32>}]} {
    %c0_i32 = arith.constant 0 : i32
    %0 = arith.cmpi eq, %arg1, %c0_i32 : i32
    %1 = arith.extui %0 : i1 to i32
    %c0_i32_0 = arith.constant 0 : i32
    %2 = arith.cmpi ne, %1, %c0_i32_0 : i32
    scf.if %2 {
      %c0_8 = arith.constant 0 : index
      %c0_9 = arith.constant 0 : index
      %15 = vector.load %arg2[%c0_8, %c0_9] : memref<8x32xf32, #tpu.memory_space<vmem>>, vector<8x32xf32>
      %16 = arith.truncf %15 : vector<8x32xf32> to vector<8x32xbf16>
      %c0_10 = arith.constant 0 : index
      %c0_11 = arith.constant 0 : index
      %17 = vector.load %arg4[%c0_10, %c0_11] : memref<32x640xbf16, #tpu.memory_space<vmem>>, vector<32x640xbf16>
      %cst_12 = arith.constant dense<0.000000e+00> : vector<8x640xf32>
      %18 = tpu.matmul %16, %17, %cst_12 {dimension_numbers = #tpu.dot_dimension_numbers<[1], [0], [0], [1], [0, 0, 1, 1], [], []>} : vector<8x32xbf16>, vector<32x640xbf16>, vector<8x640xf32> -> vector<8x640xf32>
      %c0_13 = arith.constant 0 : index
      %c0_14 = arith.constant 0 : index
      %19 = vector.load %arg5[%c0_13, %c0_14] : memref<1x640xf32, #tpu.memory_space<vmem>>, vector<1x640xf32>
      %20 = vector.broadcast %19 : vector<1x640xf32> to vector<8x640xf32>
      %21 = arith.addf %18, %20 : vector<8x640xf32>
      %22 = math.tanh %21 : vector<8x640xf32>
      %23 = arith.truncf %22 : vector<8x640xf32> to vector<8x640xbf16>
      %c0_15 = arith.constant 0 : index
      %c0_16 = arith.constant 0 : index
      %24 = vector.load %arg11[%c0_15, %c0_16] : memref<8x640xbf16, #tpu.memory_space<vmem>>, vector<8x640xbf16>
      tpu.vector_store %arg11[%c0_15, %c0_16], %23 {strides = array<i32>} : memref<8x640xbf16, #tpu.memory_space<vmem>>, vector<8x640xbf16>,
      %cst_17 = arith.constant 0.000000e+00 : f32
      %25 = vector.broadcast %cst_17 : f32 to vector<8x640xf32>
      %c0_18 = arith.constant 0 : index
      %c0_19 = arith.constant 0 : index
      %26 = vector.load %arg12[%c0_18, %c0_19] : memref<8x640xf32, #tpu.memory_space<vmem>>, vector<8x640xf32>
      tpu.vector_store %arg12[%c0_18, %c0_19], %25 {strides = array<i32>} : memref<8x640xf32, #tpu.memory_space<vmem>>, vector<8x640xf32>,
    } else {
    }
    %c128_i32 = arith.constant 128 : i32
    %3 = arith.muli %arg1, %c128_i32 : i32
    %4 = tpu.assume_multiple %3, 128 : i32
    %c0 = arith.constant 0 : index
    %c0_1 = arith.constant 0 : index
    %5 = vector.load %arg12[%c0, %c0_1] : memref<8x640xf32, #tpu.memory_space<vmem>>, vector<8x640xf32>
    %c0_2 = arith.constant 0 : index
    %6 = arith.index_cast %4 : i32 to index
    %7 = vector.load %arg11[%c0_2, %6] : memref<8x640xbf16, #tpu.memory_space<vmem>>, vector<8x128xbf16>
    %c0_3 = arith.constant 0 : index
    %c0_4 = arith.constant 0 : index
    %8 = vector.load %arg6[%c0_3, %c0_4] : memref<128x640xbf16, #tpu.memory_space<vmem>>, vector<128x640xbf16>
    %cst = arith.constant dense<0.000000e+00> : vector<8x640xf32>
    %9 = tpu.matmul %7, %8, %cst {dimension_numbers = #tpu.dot_dimension_numbers<[1], [0], [0], [1], [0, 0, 1, 1], [], []>} : vector<8x128xbf16>, vector<128x640xbf16>, vector<8x640xf32> -> vector<8x640xf32>
    %10 = arith.addf %5, %9 : vector<8x640xf32>
    %c0_5 = arith.constant 0 : index
    %c0_6 = arith.constant 0 : index
    %11 = vector.load %arg12[%c0_5, %c0_6] : memref<8x640xf32, #tpu.memory_space<vmem>>, vector<8x640xf32>
    tpu.vector_store %arg12[%c0_5, %c0_6], %10 {strides = array<i32>} : memref<8x640xf32, #tpu.memory_space<vmem>>, vector<8x640xf32>,
    %c4_i32 = arith.constant 4 : i32
    %12 = arith.cmpi eq, %arg1, %c4_i32 : i32
    %13 = arith.extui %12 : i1 to i32
    %c0_i32_7 = arith.constant 0 : i32
    %14 = arith.cmpi ne, %13, %c0_i32_7 : i32
    scf.if %14 {
      %c0_8 = arith.constant 0 : index
      %c0_9 = arith.constant 0 : index
      %15 = vector.load %arg2[%c0_8, %c0_9] : memref<8x32xf32, #tpu.memory_space<vmem>>, vector<8x32xf32>
      %16 = arith.truncf %15 : vector<8x32xf32> to vector<8x32xbf16>
      %c0_10 = arith.constant 0 : index
      %c0_11 = arith.constant 0 : index
      %17 = vector.load %arg12[%c0_10, %c0_11] : memref<8x640xf32, #tpu.memory_space<vmem>>, vector<8x640xf32>
      %c0_12 = arith.constant 0 : index
      %c0_13 = arith.constant 0 : index
      %18 = vector.load %arg7[%c0_12, %c0_13] : memref<1x640xf32, #tpu.memory_space<vmem>>, vector<1x640xf32>
      %19 = vector.broadcast %18 : vector<1x640xf32> to vector<8x640xf32>
      %20 = arith.addf %17, %19 : vector<8x640xf32>
      %21 = math.tanh %20 : vector<8x640xf32>
      %22 = arith.truncf %21 : vector<8x640xf32> to vector<8x640xbf16>
      %c0_14 = arith.constant 0 : index
      %c0_15 = arith.constant 0 : index
      %23 = vector.load %arg8[%c0_14, %c0_15] : memref<672x16xbf16, #tpu.memory_space<vmem>>, vector<640x16xbf16>
      %cst_16 = arith.constant dense<0.000000e+00> : vector<8x16xf32>
      %24 = tpu.matmul %22, %23, %cst_16 {dimension_numbers = #tpu.dot_dimension_numbers<[1], [0], [0], [1], [0, 0, 1, 1], [], []>} : vector<8x640xbf16>, vector<640x16xbf16>, vector<8x16xf32> -> vector<8x16xf32>
      %c640 = arith.constant 640 : index
      %c0_17 = arith.constant 0 : index
      %25 = vector.load %arg8[%c640, %c0_17] : memref<672x16xbf16, #tpu.memory_space<vmem>>, vector<32x16xbf16>
      %cst_18 = arith.constant dense<0.000000e+00> : vector<8x16xf32>
      %26 = tpu.matmul %16, %25, %cst_18 {dimension_numbers = #tpu.dot_dimension_numbers<[1], [0], [0], [1], [0, 0, 1, 1], [], []>} : vector<8x32xbf16>, vector<32x16xbf16>, vector<8x16xf32> -> vector<8x16xf32>
      %27 = arith.addf %24, %26 : vector<8x16xf32>
      %c0_19 = arith.constant 0 : index
      %c0_20 = arith.constant 0 : index
      %28 = vector.load %arg9[%c0_19, %c0_20] : memref<1x16xf32, #tpu.memory_space<vmem>>, vector<1x16xf32>
      %29 = vector.broadcast %28 : vector<1x16xf32> to vector<8x16xf32>
      %30 = arith.addf %27, %29 : vector<8x16xf32>
      %c0_21 = arith.constant 0 : index
      %c0_22 = arith.constant 0 : index
      %31 = vector.load %arg10[%c0_21, %c0_22] : memref<8x32xf32, #tpu.memory_space<vmem>>, vector<8x16xf32>
      tpu.vector_store %arg10[%c0_21, %c0_22], %30 {strides = array<i32>} : memref<8x32xf32, #tpu.memory_space<vmem>>, vector<8x16xf32>,
      %c0_23 = arith.constant 0 : index
      %c0_24 = arith.constant 0 : index
      %32 = vector.load %arg3[%c0_23, %c0_24] : memref<8x16xf32, #tpu.memory_space<vmem>>, vector<8x16xf32>
      %33 = arith.cmpf ogt, %30, %32 : vector<8x16xf32>
      %34 = arith.extui %33 : vector<8x16xi1> to vector<8x16xi32>
      %35 = arith.sitofp %34 : vector<8x16xi32> to vector<8x16xf32>
      %c0_25 = arith.constant 0 : index
      %c16 = arith.constant 16 : index
      %36 = vector.load %arg10[%c0_25, %c16] : memref<8x32xf32, #tpu.memory_space<vmem>>, vector<8x16xf32>
      tpu.vector_store %arg10[%c0_25, %c16], %35 {strides = array<i32>} : memref<8x32xf32, #tpu.memory_space<vmem>>, vector<8x16xf32>,
    } else {
    }
    return
  }
  func.func @transform_0(%arg0: i32, %arg1: i32) -> (i32, i32) {
    %c0_i32 = arith.constant 0 : i32
    %c0_i32_0 = arith.constant 0 : i32
    return %arg0, %c0_i32 : i32, i32
  }
  func.func @transform_1(%arg0: i32, %arg1: i32) -> (i32, i32) {
    %c0_i32 = arith.constant 0 : i32
    %c0_i32_0 = arith.constant 0 : i32
    return %arg0, %c0_i32 : i32, i32
  }
  func.func @transform_2(%arg0: i32, %arg1: i32) -> (i32, i32) {
    %c0_i32 = arith.constant 0 : i32
    %c0_i32_0 = arith.constant 0 : i32
    %c0_i32_1 = arith.constant 0 : i32
    return %c0_i32, %c0_i32_0 : i32, i32
  }
  func.func @transform_3(%arg0: i32, %arg1: i32) -> (i32, i32) {
    %c0_i32 = arith.constant 0 : i32
    %c0_i32_0 = arith.constant 0 : i32
    %c0_i32_1 = arith.constant 0 : i32
    return %c0_i32, %c0_i32_0 : i32, i32
  }
  func.func @transform_4(%arg0: i32, %arg1: i32) -> (i32, i32) {
    %c0_i32 = arith.constant 0 : i32
    %c0_i32_0 = arith.constant 0 : i32
    return %arg1, %c0_i32 : i32, i32
  }
  func.func @transform_5(%arg0: i32, %arg1: i32) -> (i32, i32) {
    %c0_i32 = arith.constant 0 : i32
    %c0_i32_0 = arith.constant 0 : i32
    %c0_i32_1 = arith.constant 0 : i32
    return %c0_i32, %c0_i32_0 : i32, i32
  }
  func.func @transform_6(%arg0: i32, %arg1: i32) -> (i32, i32) {
    %c0_i32 = arith.constant 0 : i32
    %c0_i32_0 = arith.constant 0 : i32
    %c0_i32_1 = arith.constant 0 : i32
    return %c0_i32, %c0_i32_0 : i32, i32
  }
  func.func @transform_7(%arg0: i32, %arg1: i32) -> (i32, i32) {
    %c0_i32 = arith.constant 0 : i32
    %c0_i32_0 = arith.constant 0 : i32
    %c0_i32_1 = arith.constant 0 : i32
    return %c0_i32, %c0_i32_0 : i32, i32
  }
  func.func @transform_8(%arg0: i32, %arg1: i32) -> (i32, i32) {
    %c0_i32 = arith.constant 0 : i32
    %c0_i32_0 = arith.constant 0 : i32
    return %arg0, %c0_i32 : i32, i32
  }
}

</mosaic_0001>

<bundles_post_ra>
// kernel: fnet01_forward.1
= control target key start
LH: loop header
LB: loop body
LE: loop exit
PB: predicated region body
PF: predicated region fallthrough
CT: control target
= control target key end

     0   :  { %13 = vsyncpa [#allocation5], 0  ;;  %s2542_s0 = inlined_call_operand.vmem [shape: f32[8,32], index: 0, kind: input, shape index: {}]   ;;  %s2543_s1 = inlined_call_operand.vmem [shape: f32[8,16], index: 1, kind: input, shape index: {}]   ;;  %s2544_s2 = inlined_call_operand.vmem [shape: bf16[32,640], index: 2, kind: input, shape index: {}]   ;;  %s2545_s3 = inlined_call_operand.vmem [shape: f32[1,640], index: 3, kind: input, shape index: {}]   ;;  %s2546_s4 = inlined_call_operand.hbm [shape: bf16[640,640], index: 4, kind: input, shape index: {}]   ;;  %s2547_s5 = inlined_call_operand.vmem [shape: f32[1,640], index: 5, kind: input, shape index: {}]   ;;  %s2548_s6 = inlined_call_operand.vmem [shape: bf16[672,16], index: 6, kind: input, shape index: {}]   ;;  %s2549_s7 = inlined_call_operand.vmem [shape: f32[1,16], index: 7, kind: input, shape index: {}]   ;;  %s2550_s8 = inlined_call_operand.vmem [shape: f32[8,32], index: 8, kind: output, shape index: {}]  }
   0x1   :  { %15 = vsyncpa [#allocation5 + $0x1], 0  ;;  %s2158_s27 = smov 0   ;;  %s2160_s28 = smov 0  }
   0x2   :  { %s2162_s29 = smov 0   ;;  %s2164_s30 = smov 0  }
   0x3   :  { %s2166_s9 = smov 0   ;;  %s2168_s10 = smov 0  }
   0x4 LB: > { %s1459_s11 = sadd.s32 4294967295, %s2106_s10   ;;  %s30_s12 = sadd.s32 1, %s2102_s9  ;;  %s2106_s10 = sphi %s2168_s10, %s21_s10   ;;  %s2102_s9 = sphi %s2166_s9, %s2556_s9   ;;  %s2098_s30 = sphi %s2164_s30, %s2555_s30   ;;  %s2094_s29 = sphi %s2162_s29, %s2554_s29   ;;  %s2090_s28 = sphi %s2160_s28, %s2553_s28   ;;  %s2086_s27 = sphi %s2158_s27, %s2552_s27  }
   0x5   : > { %p31_p0 = scmp.ge.s32.totalorder %s30_s12, 5  ;;  %s134_s13 = sadd.s32 1, %s2094_s29 }
   0x6   : > { %p141_p1 = scmp.ne.s32.totalorder %s2094_s29, %s2090_s28  ;;  %p142_p2 = scmp.eq.s32.totalorder %s2106_s10, 0 }
   0x7   : > { %s2558_s12 = smov (%p31_p0, %s30_s12), 0  ;;  %p147_p4 = scmp.ne.s32.totalorder %s2090_s28, %s2086_s27 }
   0x8   : > { %p143_p3 = por %p142_p2, %p141_p1  ;;  %s131_s14 = ssub.s32 %s2102_s9, %s2558_s12 }
   0x9   : > { %p148_p5 = scmp.eq.s32.totalorder %s1459_s11, 0  ;;  %p132_p6 = scmp.eq.s32.totalorder %s131_s14, 0 }
   0xa   : > { %p1951_p8 = scmp.lt.s32.totalorder %s2106_s10, 5  ;;  %s289_s17 = sand.u32 1, %s2094_s29  }
   0xb   : > { %p2197_p7 = por %p148_p5, %p147_p4  ;;  %s1943_s18 = smul.u32 320, %s2102_s9 }
   0xc   : > { %s2203_s16 = scalar_select %p132_p6, %s2094_s29, %s134_s13  }
   0xd   : > { %s1942_s19 = smul.u32 320, %s289_s17  ;;  %s299_s22 = scalar_lea.hbm %s2546_s4, %s1943_s18 }
   0xe   : > { %p1948_p9 = pnand %p1951_p8, %p143_p3  ;;  %s300_s23 = sshll.u32 %s299_s22, 4  ;;  %s301_s23 = int_to_ptr.hbm [resolvable:$true] %s300_s23 }
   0xf   : > { %s293_s24 = scalar_lea.vmem [#allocation4], %s1942_s19  ;;  %s290_s26 = scalar_lea.sflag [#allocation5], %s289_s17 }
  0x10   : > { %s302_s25 = sshll.u32 %s293_s24, 4  ;;  %s2108_s27 = smov 320   ;;  %s303_s25 = int_to_ptr.vmem [resolvable:$true] %s302_s25 }
  0x11   : > { %s2109_s11 = smov 20   ;;  %p1467_p10 = scmp.ge.s32.totalorder %s2106_s10, 1 }
  0x12   : > { %1950 = dma.hbm_to_vmem [thread:$0]  (!%p1948_p9), %s301_s23, 5120, %s303_s25, %s290_s26, %s2108_s27, %s2108_s27, %s2109_s11  }
  0x13   : > { %p310_p11 = scmp.lt.s32.totalorder %s2106_s10, 6 }
  0x15   : > { %p311_p12 = pnand %p1467_p10, %p310_p11 }
  0x16   : > { %s316_s13 = sand.u32 (!%p311_p12), 1, %s2090_s28  }
  0x17   : > { %314 = sbr.rel (%p311_p12) target bundleno = 712 (0x2c8), region = 52  ;;  %s317_s20 = scalar_lea.sflag (!%p311_p12), [#allocation5], %s316_s13 }
  0x18   : > { %s1944_s14 = smul.u32 (!%p311_p12), 320, %s316_s13 }
  0x1a   : > { %s2213_s18 = scalar_lea.vmem (!%p311_p12), [#allocation4], %s1944_s14 }
  0x1c   : > { %2081 = dma.done.wait (%p2197_p7), %s317_s20, 5120  }
  0x1d   : > { %2083 = vsyncadd (%p2197_p7), %s317_s20, 4294962176  ;;  %p1468_p13 = scmp.ne.s32.totalorder %s2098_s30, 0 }
  0x1f   : > { %378 = sbr.rel (%p1468_p13) target bundleno = 200 (0xc8), region = 60 }
  0x24   : > { %v1491_v0 = vld [vmem:[%s2544_s2 + $0x28] sm:$0xf]  ;;  %v1857_v1 = vld [vmem:[%s2544_s2 + $0x38] sm:$0xf0]  ;;  %v1855_v2 = vld [vmem:[%s2544_s2 + $0x2c] sm:$0xf] }
  0x25   : > { %v1492_v3 = vor.u32 %v1857_v1, %v1491_v0  ;;  %v1493_v4 = vld [vmem:[%s2544_s2 + $0x3c] sm:$0xf0]  ;;  %v1499_v5 = vld [vmem:[%s2544_s2 + $0x30] sm:$0xf]  ;;  %v1858_v6 = vld [vmem:[%s2544_s2 + $0x40] sm:$0xf0] }
  0x26   : > { %v1496_v7 = vor.u32 %v1855_v2, %v1493_v4  ;;  %v1500_v8 = vor.u32 %v1858_v6, %v1499_v5  ;;  %v1856_v9 = vld [vmem:[%s2544_s2 + $0x34] sm:$0xf]  ;;  %v1501_v10 = vld [vmem:[%s2544_s2 + $0x44] sm:$0xf0]  ;;  %v1471_v11 = vld [vmem:[%s2544_s2] sm:$0xf] }
  0x27   : > { %467 = vmatpush.bf16.msra.mxu0 %v1492_v3  ;;  %v1504_v12 = vor.u32 %v1856_v9, %v1501_v10  ;;  %v1852_v13 = vld [vmem:[%s2544_s2 + $0x10] sm:$0xf0]  ;;  %v1850_v14 = vld [vmem:[%s2544_s2 + $0x4] sm:$0xf]  ;;  %v1473_v15 = vld [vmem:[%s2544_s2 + $0x14] sm:$0xf0] }
  0x28   : > { %480 = vmatpush.bf16.msra.mxu1 %v1496_v7  ;;  %493 = vmatpush.bf16.msra.mxu2 %v1500_v8  ;;  %v1472_v16 = vor.u32 %v1852_v13, %v1471_v11  ;;  %v1476_v17 = vor.u32 %v1850_v14, %v1473_v15  ;;  %v1479_v18 = vld [vmem:[%s2544_s2 + $0x8] sm:$0xf]  ;;  %v1853_v19 = vld [vmem:[%s2544_s2 + $0x18] sm:$0xf0]  ;;  %v1851_v20 = vld [vmem:[%s2544_s2 + $0xc] sm:$0xf] }
  0x29   : > { %506 = vmatpush.bf16.msra.mxu3 %v1504_v12  ;;  %v1480_v21 = vor.u32 %v1853_v19, %v1479_v18  ;;  %v1481_v22 = vld [vmem:[%s2544_s2 + $0x1c] sm:$0xf0]  ;;  %v1507_v24 = vld [vmem:[%s2544_s2 + $0x38] sm:$0xf]  ;;  %v1859_v27 = vld [vmem:[%s2544_s2 + $0x48] sm:$0xf0] }
  0x2a   : > { %v379_v23 = vld [vmem:[%s2542_s0] sm:$0xff]  ;;  %v1484_v25 = vor.u32 %v1851_v20, %v1481_v22  ;;  %v1487_v28 = vld [vmem:[%s2544_s2 + $0x10] sm:$0xf]  ;;  %vm457_vm0 = vcmask 261120   ;;  %v1508_v30 = vor.u32 %v1859_v27, %v1507_v24  ;;  %v2110_v34 = vmov 0.0  }
  0x2b   : > { %v380_v26 = vpack.c.bf16 %v379_v23, %v379_v23  ;;  %v1854_v29 = vld [vmem:[%s2544_s2 + $0x20] sm:$0xf0]  ;;  %468 = vmatpush.bf16.msra.mxu0 %v1472_v16  ;;  %537 = vst [vmem:[#allocation3 + $0x8] sm:$0xff] %v2110_v34 }
  0x2c   : > { %481 = vmatpush.bf16.msra.mxu1 %v1476_v17  ;;  %494 = vmatpush.bf16.msra.mxu2 %v1480_v21  ;;  %v1488_v31 = vor.u32 %v1854_v29, %v1487_v28  ;;  %v393_v32 = vld [vmem:[%s2545_s3] sm:$0x1f]  ;;  %538 = vst [vmem:[#allocation3] sm:$0xff] %v2110_v34 }
  0x2d   : > { %507 = vmatpush.bf16.msra.mxu3 %v1484_v25  ;;  %v395_v33 = vperm.slane %v393_v32, 0  ;;  %v396_v35 = vperm.slane %v393_v32, 1  ;;  %539 = vst [vmem:[#allocation3 + $0x20] sm:$0xff] %v2110_v34  ;;  %v397_v40 = vperm.slane %v393_v32, 2  ;;  %v398_v41 = vperm.slane %v393_v32, 3 }
  0x2e   : > { %1509 = vmatmul.msk.bf16.vlgmr.msra.gmra.mxu0 %vm457_vm0, %v380_v26  ;;  %540 = vst [vmem:[#allocation3 + $0x10] sm:$0xff] %v2110_v34  ;;  %v399_v51 = vperm.slane %v393_v32, 4 }
  0x2f   : > { %519 = vmatpush.bf16.msrb.mxu0 %v1508_v30  ;;  %1510 = vmatmul.msk.bf16.vlgmr.msra.gmra.mxu1 %vm457_vm0, %v380_v26  ;;  %541 = vst [vmem:[#allocation3 + $0x18] sm:$0xff] %v2110_v34 }
  0x30   : > { %1511 = vmatmul.msk.bf16.vlgmr.msra.gmra.mxu2 %vm457_vm0, %v380_v26  ;;  %1512 = vmatmul.msk.bf16.vlgmr.msra.gmra.mxu3 %vm457_vm0, %v380_v26 }
  0x33   : > { %520 = vmatpush.bf16.msrb.mxu0 %v1488_v31 }
  0x3e   : > { %1513 = vmatmul.msk.bf16.vlgmr.msrb.gmra.mxu0 %vm457_vm0, %v380_v26 }
  0xab   : > { %v470_v36 = vpop.f32.mrf.mxu0 }
  0xac   : > { %v471_v37 = vadd.f32 %v470_v36, %v395_v33  ;;  %v483_v38 = vpop.f32.mrf.mxu1 }
  0xad   : > { %v484_v39 = vadd.f32 %v483_v38, %v396_v35 }
  0xae   : > { %2005 = vtanh.f32 %v471_v37 }
  0xaf   : > { %2007 = vtanh.f32 %v484_v39 }
  0xb3   : > { %v496_v42 = vpop.f32.mrf.mxu2  ;;  %v472_v43 = vpop.f32.mrf.mxu0 }
  0xb4   : > { %v497_v44 = vadd.f32 %v496_v42, %v397_v40  ;;  %v509_v45 = vpop.f32.mrf.mxu3  ;;  %v2006_v46 = vpop.eup %2005 }
  0xb5   : > { %v510_v47 = vadd.f32 %v509_v45, %v398_v41  ;;  %v485_v48 = vpop.f32.mrf.mxu1  ;;  %v2008_v49 = vpop.eup %2007 }
  0xb6   : > { %2009 = vtanh.f32 %v497_v44  ;;  %v531_v50 = vpack.c.bf16 %v2008_v49, %v2006_v46 }
  0xb7   : > { %2011 = vtanh.f32 %v510_v47 }
  0xb8   : > { %534 = vst [vmem:[#allocation2] sm:$0xff] %v531_v50 }
  0xbb   : > { %v498_v52 = vpop.f32.mrf.mxu2  ;;  %v522_v55 = vpop.f32.mrf.mxu0 }
  0xbc   : > { %v2010_v53 = vpop.eup %2009  ;;  %v511_v54 = vpop.f32.mrf.mxu3  ;;  %v523_v57 = vadd.f32 %v522_v55, %v399_v51 }
  0xbd   : > { %v2012_v56 = vpop.eup %2011 }
  0xbe   : > { %v532_v58 = vpack.c.bf16 %v2012_v56, %v2010_v53  ;;  %2013 = vtanh.f32 %v523_v57 }
  0xc0   : > { %535 = vst [vmem:[#allocation2 + $0x8] sm:$0xff] %v532_v58 }
  0xc3   : > { %v524_v59 = vpop.f32.mrf.mxu0 }
  0xc4   : > { %v2014_v60 = vpop.eup %2013 }
  0xc5   : > { %v533_v61 = vpack.c.bf16 %v2014_v60, %v2014_v60 }
  0xc7   : > { %536 = vst [vmem:[#allocation2 + $0x10] sm:$0xf] %v533_v61 }
  0xc8 PF: > { %v1658_v62 = vld [vmem:[%s2213_s18 + $0x118] sm:$0xf]  ;;  %v1897_v63 = vld [vmem:[%s2213_s18 + $0x128] sm:$0xf0]  ;;  %v1638_v0 = vld [vmem:[%s2213_s18 + $0xf0] sm:$0xf] }
  0xc9   : > { %v1659_v1 = vor.u32 %v1897_v63, %v1658_v62  ;;  %v1892_v2 = vld [vmem:[%s2213_s18 + $0x100] sm:$0xf0]  ;;  %v1666_v3 = vld [vmem:[%s2213_s18 + $0x120] sm:$0xf]  ;;  %v1898_v5 = vld [vmem:[%s2213_s18 + $0x130] sm:$0xf0] }
  0xca   : > { %v1639_v4 = vor.u32 %v1892_v2, %v1638_v0  ;;  %v1896_v6 = vld [vmem:[%s2213_s18 + $0x124] sm:$0xf]  ;;  %v1668_v7 = vld [vmem:[%s2213_s18 + $0x134] sm:$0xf0]  ;;  %v1618_v8 = vld [vmem:[%s2213_s18 + $0xc8] sm:$0xf]  ;;  %v1667_v10 = vor.u32 %v1898_v5, %v1666_v3 }
  0xcb   : > { %809 = vmatpush.bf16.msra.mxu0 %v1659_v1  ;;  %v1887_v9 = vld [vmem:[%s2213_s18 + $0xd8] sm:$0xf0]  ;;  %v1671_v11 = vor.u32 %v1896_v6, %v1668_v7  ;;  %v1646_v12 = vld [vmem:[%s2213_s18 + $0xf8] sm:$0xf]  ;;  %v1893_v13 = vld [vmem:[%s2213_s18 + $0x108] sm:$0xf0] }
  0xcc   : > { %v1891_v14 = vld [vmem:[%s2213_s18 + $0xfc] sm:$0xf]  ;;  %v1648_v15 = vld [vmem:[%s2213_s18 + $0x10c] sm:$0xf0]  ;;  %v1598_v16 = vld [vmem:[%s2213_s18 + $0xa0] sm:$0xf]  ;;  %835 = vmatpush.bf16.msra.mxu2 %v1667_v10  ;;  %v1647_v17 = vor.u32 %v1893_v13, %v1646_v12  ;;  %v1619_v20 = vor.u32 %v1887_v9, %v1618_v8 }
  0xcd   : > { %848 = vmatpush.bf16.msra.mxu3 %v1671_v11  ;;  %v1651_v18 = vor.u32 %v1891_v14, %v1648_v15  ;;  %v1895_v19 = vld [vmem:[%s2213_s18 + $0x11c] sm:$0xf]  ;;  %v1660_v21 = vld [vmem:[%s2213_s18 + $0x12c] sm:$0xf0]  ;;  %v1888_v23 = vld [vmem:[%s2213_s18 + $0xe0] sm:$0xf0] }
  0xce   : > { %v1626_v22 = vld [vmem:[%s2213_s18 + $0xd0] sm:$0xf]  ;;  %v1882_v24 = vld [vmem:[%s2213_s18 + $0xb0] sm:$0xf0]  ;;  %v1663_v25 = vor.u32 %v1895_v19, %v1660_v21  ;;  %v1628_v27 = vld [vmem:[%s2213_s18 + $0xe4] sm:$0xf0] }
  0xcf   : > { %810 = vmatpush.bf16.msra.mxu0 %v1639_v4  ;;  %v1886_v26 = vld [vmem:[%s2213_s18 + $0xd4] sm:$0xf]  ;;  %v1640_v29 = vld [vmem:[%s2213_s18 + $0x104] sm:$0xf0]  ;;  %v1578_v30 = vld [vmem:[%s2213_s18 + $0x78] sm:$0xf]  ;;  %v1627_v31 = vor.u32 %v1888_v23, %v1626_v22  ;;  %v1599_v34 = vor.u32 %v1882_v24, %v1598_v16 }
  0xd0   : > { %v1890_v28 = vld [vmem:[%s2213_s18 + $0xf4] sm:$0xf]  ;;  %836 = vmatpush.bf16.msra.mxu2 %v1647_v17  ;;  %v1631_v32 = vor.u32 %v1886_v26, %v1628_v27  ;;  %v1606_v33 = vld [vmem:[%s2213_s18 + $0xa8] sm:$0xf]  ;;  %822 = vmatpush.bf16.msra.mxu1 %v1663_v25  ;;  %v1883_v36 = vld [vmem:[%s2213_s18 + $0xb8] sm:$0xf0] }
  0xd1   : > { %849 = vmatpush.bf16.msra.mxu3 %v1651_v18  ;;  %v1643_v35 = vor.u32 %v1890_v28, %v1640_v29  ;;  %v1881_v37 = vld [vmem:[%s2213_s18 + $0xac] sm:$0xf]  ;;  %v1608_v38 = vld [vmem:[%s2213_s18 + $0xbc] sm:$0xf0]  ;;  %v1558_v42 = vld [vmem:[%s2213_s18 + $0x50] sm:$0xf]  ;;  %v1607_v43 = vor.u32 %v1883_v36, %v1606_v33 }
  0xd2   : > { %v1877_v39 = vld [vmem:[%s2213_s18 + $0x88] sm:$0xf0]  ;;  %v1620_v41 = vld [vmem:[%s2213_s18 + $0xdc] sm:$0xf0]  ;;  %v1611_v44 = vor.u32 %v1881_v37, %v1608_v38  ;;  %v1878_v48 = vld [vmem:[%s2213_s18 + $0x90] sm:$0xf0] }
  0xd3   : > { %811 = vmatpush.bf16.msra.mxu0 %v1619_v20  ;;  %v1885_v40 = vld [vmem:[%s2213_s18 + $0xcc] sm:$0xf]  ;;  %v1586_v45 = vld [vmem:[%s2213_s18 + $0x80] sm:$0xf]  ;;  %v1579_v46 = vor.u32 %v1877_v39, %v1578_v30  ;;  %v1876_v49 = vld [vmem:[%s2213_s18 + $0x84] sm:$0xf] }
  0xd4   : > { %837 = vmatpush.bf16.msra.mxu2 %v1627_v31  ;;  %823 = vmatpush.bf16.msra.mxu1 %v1643_v35  ;;  %v1623_v47 = vor.u32 %v1885_v40, %v1620_v41  ;;  %v1588_v50 = vld [vmem:[%s2213_s18 + $0x94] sm:$0xf0]  ;;  %v1872_v51 = vld [vmem:[%s2213_s18 + $0x60] sm:$0xf0]  ;;  %s1514_s21 = sshll.u32 %s2098_s30, 7  ;;  %v1587_v55 = vor.u32 %v1878_v48, %v1586_v45  ;;  %p1676_p0 = scmp.ne.s32.totalorder %s2098_s30, 4 }
  0xd5   : > { %850 = vmatpush.bf16.msra.mxu3 %v1631_v32  ;;  %v1880_v52 = vld [vmem:[%s2213_s18 + $0xa4] sm:$0xf]  ;;  %v1600_v53 = vld [vmem:[%s2213_s18 + $0xb4] sm:$0xf0]  ;;  %v1538_v54 = vld [vmem:[%s2213_s18 + $0x28] sm:$0xf]  ;;  %v1591_v56 = vor.u32 %v1876_v49, %v1588_v50  ;;  %v1559_v59 = vor.u32 %v1872_v51, %v1558_v42 }
  0xd6   : > { %v1566_v57 = vld [vmem:[%s2213_s18 + $0x58] sm:$0xf]  ;;  %v1873_v58 = vld [vmem:[%s2213_s18 + $0x68] sm:$0xf0]  ;;  %v1603_v60 = vor.u32 %v1880_v52, %v1600_v53  ;;  %v1871_v61 = vld [vmem:[%s2213_s18 + $0x5c] sm:$0xf] }
  0xd7   : > { %812 = vmatpush.bf16.msra.mxu0 %v1599_v34  ;;  %v1568_v62 = vld [vmem:[%s2213_s18 + $0x6c] sm:$0xf0]  ;;  %s2332_s22 = sshra.s32 %s1514_s21, 7  ;;  %v1867_v63 = vld [vmem:[%s2213_s18 + $0x38] sm:$0xf0]  ;;  %v1567_v3 = vor.u32 %v1873_v58, %v1566_v57 }
  0xd8   : > { %838 = vmatpush.bf16.msra.mxu2 %v1607_v43  ;;  %824 = vmatpush.bf16.msra.mxu1 %v1623_v47  ;;  %v1875_v0 = vld [vmem:[%s2213_s18 + $0x7c] sm:$0xf]  ;;  %v1580_v1 = vld [vmem:[%s2213_s18 + $0x8c] sm:$0xf0]  ;;  %v1518_v2 = vld [vmem:[%s2213_s18] sm:$0xf]  ;;  %v1571_v4 = vor.u32 %v1871_v61, %v1568_v62  ;;  %v1539_v6 = vor.u32 %v1867_v63, %v1538_v54 }
  0xd9   : > { %851 = vmatpush.bf16.msra.mxu3 %v1611_v44  ;;  %s1515_s23 = sshll.u32 %s2332_s22, 2  ;;  %v1546_v5 = vld [vmem:[%s2213_s18 + $0x30] sm:$0xf]  ;;  %v1583_v7 = vor.u32 %v1875_v0, %v1580_v1  ;;  %v1868_v8 = vld [vmem:[%s2213_s18 + $0x40] sm:$0xf0]  ;;  %v544_v58 = vld [vmem:[#allocation3] sm:$0xff] }
  0xda   : > { %v1866_v9 = vld [vmem:[%s2213_s18 + $0x34] sm:$0xf]  ;;  %v1548_v10 = vld [vmem:[%s2213_s18 + $0x44] sm:$0xf0]  ;;  %v1899_v15 = vld [vmem:[%s2213_s18 + $0x138] sm:$0xf0]  ;;  %v1547_v16 = vor.u32 %v1868_v8, %v1546_v5 }
  0xdb   : > { %813 = vmatpush.bf16.msra.mxu0 %v1579_v46  ;;  %v1862_v11 = vld [vmem:[%s2213_s18 + $0x10] sm:$0xf0]  ;;  %v1560_v13 = vld [vmem:[%s2213_s18 + $0x64] sm:$0xf0]  ;;  %v1551_v17 = vor.u32 %v1866_v9, %v1548_v10  ;;  %v1863_v21 = vld [vmem:[%s2213_s18 + $0x18] sm:$0xf0] }
  0xdc   : > { %839 = vmatpush.bf16.msra.mxu2 %v1587_v55  ;;  %825 = vmatpush.bf16.msra.mxu1 %v1603_v60  ;;  %v1870_v12 = vld [vmem:[%s2213_s18 + $0x54] sm:$0xf]  ;;  %v1674_v14 = vld [vmem:[%s2213_s18 + $0x128] sm:$0xf]  ;;  %v1519_v18 = vor.u32 %v1862_v11, %v1518_v2  ;;  %v1861_v22 = vld [vmem:[%s2213_s18 + $0xc] sm:$0xf] }
  0xdd   : > { %852 = vmatpush.bf16.msra.mxu3 %v1591_v56  ;;  %v1563_v19 = vor.u32 %v1870_v12, %v1560_v13  ;;  %v1526_v20 = vld [vmem:[%s2213_s18 + $0x8] sm:$0xf]  ;;  %v1675_v23 = vor.u32 %v1899_v15, %v1674_v14  ;;  %v1528_v24 = vld [vmem:[%s2213_s18 + $0x1c] sm:$0xf0]  ;;  %v1865_v25 = vld [vmem:[%s2213_s18 + $0x2c] sm:$0xf] }
  0xde   : > { %v1540_v26 = vld [vmem:[%s2213_s18 + $0x3c] sm:$0xf0]  ;;  %v1894_v28 = vld [vmem:[%s2213_s18 + $0x110] sm:$0xf0]  ;;  %v1527_v29 = vor.u32 %v1863_v21, %v1526_v20  ;;  %s551_s24 = scalar_lea.vmem [#allocation2], %s1515_s23  ;;  %v1531_v31 = vor.u32 %v1861_v22, %v1528_v24  ;;  %v546_v62 = vld [vmem:[#allocation3 + $0x10] sm:$0xff] }
  0xdf   : > { %814 = vmatpush.bf16.msra.mxu0 %v1559_v59  ;;  %v1654_v27 = vld [vmem:[%s2213_s18 + $0x100] sm:$0xf]  ;;  %v552_v30 = vld [vmem:[%s551_s24] sm:$0xf]  ;;  %v1543_v32 = vor.u32 %v1865_v25, %v1540_v26  ;;  %v1520_v35 = vld [vmem:[%s2213_s18 + $0x14] sm:$0xf0] }
  0xe0   : > { %840 = vmatpush.bf16.msra.mxu2 %v1567_v3  ;;  %826 = vmatpush.bf16.msra.mxu1 %v1583_v7  ;;  %v1655_v33 = vor.u32 %v1894_v28, %v1654_v27  ;;  %v1860_v34 = vld [vmem:[%s2213_s18 + $0x4] sm:$0xf]  ;;  %v1634_v36 = vld [vmem:[%s2213_s18 + $0xd8] sm:$0xf]  ;;  %v1889_v37 = vld [vmem:[%s2213_s18 + $0xe8] sm:$0xf0] }
  0xe1   : > { %853 = vmatpush.bf16.msra.mxu3 %v1571_v4  ;;  %v1523_v38 = vor.u32 %v1860_v34, %v1520_v35  ;;  %v1635_v39 = vor.u32 %v1889_v37, %v1634_v36  ;;  %v1614_v40 = vld [vmem:[%s2213_s18 + $0xb0] sm:$0xf]  ;;  %v1884_v41 = vld [vmem:[%s2213_s18 + $0xc0] sm:$0xf0]  ;;  %v1594_v43 = vld [vmem:[%s2213_s18 + $0x88] sm:$0xf] }
  0xe2   : > { %v1615_v42 = vor.u32 %v1884_v41, %v1614_v40  ;;  %v1879_v44 = vld [vmem:[%s2213_s18 + $0x98] sm:$0xf0]  ;;  %v1574_v46 = vld [vmem:[%s2213_s18 + $0x60] sm:$0xf]  ;;  %v1874_v47 = vld [vmem:[%s2213_s18 + $0x70] sm:$0xf0] }
  0xe3   : > { %815 = vmatpush.bf16.msra.mxu0 %v1539_v6  ;;  %v1595_v45 = vor.u32 %v1879_v44, %v1594_v43  ;;  %v1575_v48 = vor.u32 %v1874_v47, %v1574_v46  ;;  %v1554_v49 = vld [vmem:[%s2213_s18 + $0x38] sm:$0xf]  ;;  %v1869_v50 = vld [vmem:[%s2213_s18 + $0x48] sm:$0xf0]  ;;  %v1534_v52 = vld [vmem:[%s2213_s18 + $0x10] sm:$0xf] }
  0xe4   : > { %841 = vmatpush.bf16.msra.mxu2 %v1547_v16  ;;  %827 = vmatpush.bf16.msra.mxu1 %v1563_v19  ;;  %v1555_v51 = vor.u32 %v1869_v50, %v1554_v49  ;;  %v1864_v53 = vld [vmem:[%s2213_s18 + $0x20] sm:$0xf0]  ;;  %v545_v59 = vld [vmem:[#allocation3 + $0x20] sm:$0xff]  ;;  %v547_v7 = vld [vmem:[#allocation3 + $0x18] sm:$0xff]  ;;  %s2112_s23 = smov (!%p1676_p0), 16  }
  0xe5   : > { %854 = vmatpush.bf16.msra.mxu3 %v1551_v17  ;;  %v1535_v54 = vor.u32 %v1864_v53, %v1534_v52  ;;  %v543_v55 = vld [vmem:[#allocation3 + $0x8] sm:$0xff] }
  0xe7   : > { %816 = vmatpush.bf16.msra.mxu0 %v1519_v18 }
  0xe8   : > { %842 = vmatpush.bf16.msra.mxu2 %v1527_v29  ;;  %828 = vmatpush.bf16.msra.mxu1 %v1543_v32 }
  0xe9   : > { %855 = vmatpush.bf16.msra.mxu3 %v1531_v31 }
  0xea   : > { %817 = vmatmul.bf16.vlgmr.msra.gmra.mxu0 %v552_v30 }
  0xeb   : > { %861 = vmatpush.bf16.msrb.mxu0 %v1675_v23  ;;  %843 = vmatmul.bf16.vlgmr.msra.gmra.mxu2 %v552_v30 }
  0xec   : > { %856 = vmatmul.bf16.vlgmr.msra.gmra.mxu3 %v552_v30  ;;  %829 = vmatpush.bf16.msra.mxu1 %v1523_v38 }
  0xef   : > { %862 = vmatpush.bf16.msrb.mxu0 %v1655_v33  ;;  %830 = vmatmul.bf16.vlgmr.msra.gmra.mxu1 %v552_v30 }
  0xf3   : > { %863 = vmatpush.bf16.msrb.mxu0 %v1635_v39 }
  0xf7   : > { %864 = vmatpush.bf16.msrb.mxu0 %v1615_v42 }
  0xfb   : > { %865 = vmatpush.bf16.msrb.mxu0 %v1595_v45 }
  0xff   : > { %866 = vmatpush.bf16.msrb.mxu0 %v1575_v48 }
 0x103   : > { %867 = vmatpush.bf16.msrb.mxu0 %v1555_v51 }
 0x107   : > { %868 = vmatpush.bf16.msrb.mxu0 %v1535_v54 }
 0x10a   : > { %869 = vmatmul.bf16.vlgmr.msrb.gmra.mxu0 %v552_v30 }
 0x167   : > { %v818_v56 = vpop.f32.mrf.mxu0 }
 0x168   : > { %v874_v57 = vadd.f32 %v818_v56, %v543_v55 }
 0x16a   : > { %879 = vst [vmem:[#allocation3 + $0x8] sm:$0xff] %v874_v57 }
 0x16c   : > { %v831_v61 = vpop.f32.mrf.mxu1 }
 0x16d   : > { %v875_v63 = vadd.f32 %v831_v61, %v544_v58 }
 0x16e   : > { %v844_v0 = vpop.f32.mrf.mxu2 }
 0x16f   : > { %v820_v60 = vpop.f32.mrf.mxu0  ;;  %v876_v1 = vadd.f32 %v844_v0, %v545_v59  ;;  %v857_v2 = vpop.f32.mrf.mxu3  ;;  %880 = vst [vmem:[#allocation3] sm:$0xff] %v875_v63 }
 0x170   : > { %v877_v3 = vadd.f32 %v857_v2, %v546_v62 }
 0x171   : > { %881 = vst [vmem:[#allocation3 + $0x20] sm:$0xff] %v876_v1 }
 0x172   : > { %882 = vst [vmem:[#allocation3 + $0x10] sm:$0xff] %v877_v3 }
 0x174   : > { %v833_v4 = vpop.f32.mrf.mxu1 }
 0x176   : > { %v846_v5 = vpop.f32.mrf.mxu2 }
 0x177   : > { %v859_v6 = vpop.f32.mrf.mxu3 }
 0x187   : > { %v870_v8 = vpop.f32.mrf.mxu0 }
 0x188   : > { %v878_v9 = vadd.f32 %v870_v8, %v547_v7 }
 0x18a   : > { %883 = vst [vmem:[#allocation3 + $0x18] sm:$0xff] %v878_v9 }
 0x18b   : > { %887 = sbr.rel (%p1676_p0) target bundleno = 712 (0x2c8), region = 64 }
 0x18f   : > { %v872_v10 = vpop.f32.mrf.mxu0 }
 0x190   : > { %v1907_v11 = vld [vmem:[%s2548_s6 + $0x38] sm:$0xff]  ;;  %v1906_v14 = vld [vmem:[%s2548_s6 + $0x30] sm:$0xff]  ;;  %v1941_v16 = vld [vmem:[%s2548_s6 + $0x148] sm:$0xff]  ;;  %vm1018_vm1 = vcmask 261120   ;;  %vm1345_vm2 = vcmask 130048   ;;  %vm1355_vm4 = vcmask 261248  }
 0x191   : > { %v1915_v12 = vld [vmem:[%s2548_s6 + $0x78] sm:$0xff]  ;;  %1275 = vmatpush.bf16.msra.mxu1 %v1907_v11  ;;  %v1914_v15 = vld [vmem:[%s2548_s6 + $0x70] sm:$0xff]  ;;  %1028 = vmatpush.bf16.msra.mxu0 %v1941_v16  ;;  %v1940_v18 = vld [vmem:[%s2548_s6 + $0x140] sm:$0xff] }
 0x192   : > { %v1923_v13 = vld [vmem:[%s2548_s6 + $0xb8] sm:$0xff]  ;;  %1288 = vmatpush.bf16.msra.mxu2 %v1915_v12  ;;  %v1922_v17 = vld [vmem:[%s2548_s6 + $0xb0] sm:$0xff]  ;;  %v1905_v20 = vld [vmem:[%s2548_s6 + $0x28] sm:$0xff] }
 0x193   : > { %1301 = vmatpush.bf16.msra.mxu3 %v1923_v13  ;;  %v1931_v19 = vld [vmem:[%s2548_s6 + $0xf8] sm:$0xff]  ;;  %v1913_v21 = vld [vmem:[%s2548_s6 + $0x68] sm:$0xff]  ;;  %v1930_v23 = vld [vmem:[%s2548_s6 + $0xf0] sm:$0xff] }
 0x194   : > { %v1921_v22 = vld [vmem:[%s2548_s6 + $0xa8] sm:$0xff]  ;;  %v888_v24 = vld [vmem:[%s2542_s0] sm:$0xff]  ;;  %v891_v34 = vld [vmem:[#allocation3] sm:$0xff] }
 0x195   : > { %1276 = vmatpush.bf16.msra.mxu1 %v1906_v14  ;;  %1029 = vmatpush.bf16.msra.mxu0 %v1940_v18  ;;  %v1904_v25 = vld [vmem:[%s2548_s6 + $0x20] sm:$0xff]  ;;  %v889_v27 = vpack.c.bf16 %v888_v24, %v888_v24  ;;  %v1929_v33 = vld [vmem:[%s2548_s6 + $0xe8] sm:$0xff]  ;;  %v1903_v36 = vld [vmem:[%s2548_s6 + $0x18] sm:$0xff] }
 0x196   : > { %1289 = vmatpush.bf16.msra.mxu2 %v1914_v15  ;;  %v1912_v26 = vld [vmem:[%s2548_s6 + $0x60] sm:$0xff]  ;;  %v1911_v37 = vld [vmem:[%s2548_s6 + $0x58] sm:$0xff]  ;;  %v1902_v44 = vld [vmem:[%s2548_s6 + $0x10] sm:$0xff] }
 0x197   : > { %1302 = vmatpush.bf16.msra.mxu3 %v1922_v17  ;;  %v1920_v28 = vld [vmem:[%s2548_s6 + $0xa0] sm:$0xff]  ;;  %v892_v38 = vld [vmem:[#allocation3 + $0x20] sm:$0xff]  ;;  %v1901_v50 = vld [vmem:[%s2548_s6 + $0x8] sm:$0xff] }
 0x198   : > { %v2427_v29 = vld [vmem:[%s2547_s5] sm:$0x1f]  ;;  %1685 = vmatmul.msk.bf16.vlgmr.msra.gmra.mxu0 %vm1018_vm1, %v889_v27  ;;  %v1919_v39 = vld [vmem:[%s2548_s6 + $0x98] sm:$0xff]  ;;  %v1910_v45 = vld [vmem:[%s2548_s6 + $0x50] sm:$0xff] }
 0x199   : > { %1314 = vmatpush.bf16.msrb.mxu0 %v1931_v19  ;;  %1277 = vmatpush.bf16.msra.mxu1 %v1905_v20  ;;  %v890_v30 = vld [vmem:[#allocation3 + $0x8] sm:$0xff]  ;;  %v897_v31 = vperm.slane %v2427_v29, 0  ;;  %v898_v32 = vperm.slane %v2427_v29, 1  ;;  %v899_v35 = vperm.slane %v2427_v29, 2  ;;  %v1918_v46 = vld [vmem:[%s2548_s6 + $0x90] sm:$0xff]  ;;  %v900_v47 = vperm.slane %v2427_v29, 3 }
 0x19a   : > { %1290 = vmatpush.bf16.msra.mxu2 %v1913_v21  ;;  %v1928_v42 = vld [vmem:[%s2548_s6 + $0xe0] sm:$0xff]  ;;  %v1927_v48 = vld [vmem:[%s2548_s6 + $0xd8] sm:$0xff]  ;;  %v1909_v51 = vld [vmem:[%s2548_s6 + $0x48] sm:$0xff]  ;;  %v901_v8 = vperm.slane %v2427_v29, 4 }
 0x19b   : > { %1303 = vmatpush.bf16.msra.mxu3 %v1921_v22  ;;  %v907_v40 = vadd.f32 %v897_v31, %v890_v30  ;;  %v908_v41 = vadd.f32 %v898_v32, %v891_v34  ;;  %v909_v43 = vadd.f32 %v899_v35, %v892_v38  ;;  %v893_v49 = vld [vmem:[#allocation3 + $0x10] sm:$0xff]  ;;  %v1926_v55 = vld [vmem:[%s2548_s6 + $0xd0] sm:$0xff]  ;;  %v1939_v60 = vld [vmem:[%s2548_s6 + $0x138] sm:$0xff] }
 0x19c   : > { %v1917_v52 = vld [vmem:[%s2548_s6 + $0x88] sm:$0xff]  ;;  %v910_v53 = vadd.f32 %v900_v47, %v893_v49  ;;  %v1900_v57 = vld [vmem:[%s2548_s6] sm:$0xff]  ;;  %v1938_v2 = vld [vmem:[%s2548_s6 + $0x130] sm:$0xff] }
 0x19d   : > { %1315 = vmatpush.bf16.msrb.mxu0 %v1930_v23  ;;  %1278 = vmatpush.bf16.msra.mxu1 %v1904_v25  ;;  %2016 = vtanh.f32 %v907_v40  ;;  %v1908_v58 = vld [vmem:[%s2548_s6 + $0x40] sm:$0xff]  ;;  %v1925_v1 = vld [vmem:[%s2548_s6 + $0xc8] sm:$0xff]  ;;  %v1935_v10 = vld [vmem:[%s2548_s6 + $0x118] sm:$0xff] }
 0x19e   : > { %1291 = vmatpush.bf16.msra.mxu2 %v1912_v26  ;;  %2018 = vtanh.f32 %v908_v41  ;;  %v1916_v61 = vld [vmem:[%s2548_s6 + $0x80] sm:$0xff]  ;;  %v1937_v5 = vld [vmem:[%s2548_s6 + $0x128] sm:$0xff]  ;;  %v1934_v12 = vld [vmem:[%s2548_s6 + $0x110] sm:$0xff] }
 0x19f   : > { %1304 = vmatpush.bf16.msra.mxu3 %v1920_v28  ;;  %2020 = vtanh.f32 %v909_v43  ;;  %v1924_v4 = vld [vmem:[%s2548_s6 + $0xc0] sm:$0xff]  ;;  %v894_v9 = vld [vmem:[#allocation3 + $0x18] sm:$0xff] }
 0x1a0   : > { %2022 = vtanh.f32 %v910_v53  ;;  %v1936_v7 = vld [vmem:[%s2548_s6 + $0x120] sm:$0xff]  ;;  %v911_v11 = vadd.f32 %v901_v8, %v894_v9  ;;  %v1933_v13 = vld [vmem:[%s2548_s6 + $0x108] sm:$0xff] }
 0x1a1   : > { %1316 = vmatpush.bf16.msrb.mxu0 %v1929_v33  ;;  %1279 = vmatpush.bf16.msra.mxu1 %v1903_v36  ;;  %v1932_v15 = vld [vmem:[%s2548_s6 + $0x100] sm:$0xff]  ;;  %v2111_v36 = vmov 0.0  }
 0x1a2   : > { %1292 = vmatpush.bf16.msra.mxu2 %v1911_v37  ;;  %2024 = vtanh.f32 %v911_v11  ;;  %v2015_v31 = vld [vmem:[%s2549_s7] ss:$0 sm:$0xff] }
 0x1a3   : > { %1305 = vmatpush.bf16.msra.mxu3 %v1919_v39  ;;  %v2017_v54 = vpop.eup %2016  ;;  %v1347_v34 = vld [vmem:[%s2543_s1] sm:$0xff] }
 0x1a4   : > { %v2019_v56 = vpop.eup %2018  ;;  %v917_v62 = vpack.c.bf16 %v2017_v54, %v2017_v54 }
 0x1a5   : > { %1317 = vmatpush.bf16.msrb.mxu0 %v1928_v42  ;;  %1280 = vmatpush.bf16.msra.mxu1 %v1902_v44  ;;  %v2021_v59 = vpop.eup %2020  ;;  %v918_v63 = vpack.c.bf16 %v2019_v56, %v2019_v56 }
 0x1a6   : > { %1293 = vmatpush.bf16.msra.mxu2 %v1910_v45  ;;  %v919_v0 = vpack.c.bf16 %v2021_v59, %v2021_v59  ;;  %v2023_v3 = vpop.eup %2022 }
 0x1a7   : > { %1306 = vmatpush.bf16.msra.mxu3 %v1918_v46  ;;  %v920_v6 = vpack.c.bf16 %v2023_v3, %v2023_v3 }
 0x1a8   : > { %v2025_v14 = vpop.eup %2024 }
 0x1a9   : > { %1318 = vmatpush.bf16.msrb.mxu0 %v1927_v48  ;;  %1281 = vmatpush.bf16.msra.mxu1 %v1901_v50  ;;  %v921_v16 = vpack.c.bf16 %v2025_v14, %v2025_v14 }
 0x1aa   : > { %1294 = vmatpush.bf16.msra.mxu2 %v1909_v51 }
 0x1ab   : > { %1307 = vmatpush.bf16.msra.mxu3 %v1917_v52 }
 0x1ad   : > { %1319 = vmatpush.bf16.msrb.mxu0 %v1926_v55  ;;  %1282 = vmatpush.bf16.msra.mxu1 %v1900_v57 }
 0x1ae   : > { %1295 = vmatpush.bf16.msra.mxu2 %v1908_v58 }
 0x1af   : > { %1308 = vmatpush.bf16.msra.mxu3 %v1916_v61 }
 0x1b0   : > { %1283 = vmatmul.bf16.vlgmr.msra.gmra.mxu1 %v917_v62 }
 0x1b1   : > { %1327 = vmatpush.bf16.msrb.mxu1 %v1939_v60  ;;  %1296 = vmatmul.bf16.vlgmr.msra.gmra.mxu2 %v918_v63 }
 0x1b2   : > { %1309 = vmatmul.bf16.vlgmr.msra.gmra.mxu3 %v919_v0  ;;  %1320 = vmatpush.bf16.msrb.mxu0 %v1925_v1 }
 0x1b5   : > { %1328 = vmatpush.bf16.msrb.mxu1 %v1938_v2 }
 0x1b6   : > { %1321 = vmatpush.bf16.msrb.mxu0 %v1924_v4 }
 0x1b9   : > { %1329 = vmatpush.bf16.msrb.mxu1 %v1937_v5  ;;  %1322 = vmatmul.bf16.vlgmr.msrb.gmra.mxu0 %v920_v6 }
 0x1bd   : > { %1330 = vmatpush.bf16.msrb.mxu1 %v1936_v7 }
 0x1c1   : > { %1331 = vmatpush.bf16.msrb.mxu1 %v1935_v10 }
 0x1c5   : > { %1332 = vmatpush.bf16.msrb.mxu1 %v1934_v12 }
 0x1c9   : > { %1333 = vmatpush.bf16.msrb.mxu1 %v1933_v13 }
 0x1cd   : > { %1334 = vmatpush.bf16.msrb.mxu1 %v1932_v15 }
 0x1d0   : > { %1335 = vmatmul.bf16.vlgmr.msrb.gmra.mxu1 %v921_v16 }
 0x215   : > { %v1031_v17 = vpop.f32.mrf.mxu0 }
 0x21d   : > { %v1033_v18 = vpop.f32.mrf.mxu0 }
 0x22d   : > { %v1284_v19 = vpop.f32.mrf.mxu1 }
 0x22e   : > { %v1285_v26 = vadd.f32 %v1284_v19, %v1031_v17 }
 0x234   : > { %v1297_v20 = vpop.f32.mrf.mxu2 }
 0x235   : > { %v1310_v21 = vpop.f32.mrf.mxu3  ;;  %v1286_v22 = vpop.f32.mrf.mxu1  ;;  %v1298_v28 = vadd.f32 %v1297_v20, %v1285_v26 }
 0x236   : > { %v1323_v23 = vpop.f32.mrf.mxu0 }
 0x237   : > { %v1311_v29 = vadd.f32 %v1310_v21, %v1298_v28 }
 0x239   : > { %v1324_v30 = vadd.f32 %v1323_v23, %v1311_v29 }
 0x23c   : > { %v1299_v24 = vpop.f32.mrf.mxu2 }
 0x23d   : > { %v1312_v25 = vpop.f32.mrf.mxu3 }
 0x23e   : > { %v1325_v27 = vpop.f32.mrf.mxu0 }
 0x24d   : > { %v1336_v32 = vpop.f32.mrf.mxu1 }
 0x24e   : > { %v1337_v33 = vadd.f32 %v1336_v32, %v1324_v30 }
 0x250   : > { %v1344_v35 = vadd.f32 %v2015_v31, %v1337_v33 }
 0x252   : > { %vm1348_vm3 = vcmp.gt.f32.partialorder %v1344_v35, %v1347_v34  ;;  %1346 = vst.msk [vmem:[%s2550_s8] sm:$0xff] %vm1345_vm2, %v1344_v35 }
 0x253   : > { %v1846_v37 = vsel %vm1348_vm3, 1.0, %v2111_v36 }
 0x254   : > { %1352 = vrot.lane.b32.xlu0 %v1846_v37, %s2112_s23 }
 0x255   : > { %v1338_v38 = vpop.f32.mrf.mxu1 }
 0x2c6   : > { %v1353_v39 = vpop.permute.xlu0 %1352 }
 0x2c7   : > { %1356 = vst.msk [vmem:[%s2550_s8] sm:$0xff] %vm1355_vm4, %v1353_v39 }
 0x2c8 PF: > { %s21_s10 = sadd.s32 1, %s2106_s10   ;;  %s2552_s27 = smov %s2090_s28 }
 0x2c9   : > { %p18_p1 = scmp.ge.s32.totalorder %s21_s10, 7   ;;  %s2553_s28 = smov %s2094_s29 }
 0x2ca   : > { %s2554_s29 = smov %s2203_s16  ;;  %s2555_s30 = smov %s2102_s9 }
 0x2cb   : > { %s2556_s9 = smov %s2558_s12  ;;  %20 = sbr.rel (!%p18_p1) target bundleno = 4 (0x4), region = 107 }
 0x2d0   :  { %1376 = vsyncpa [#allocation5], 1 }
 0x2d1   :  { %1378 = vsyncpa [#allocation5 + $0x1], 1 }

</bundles_post_ra>
